<compile_context>
chip_gen: v6e
topology: v6e:2x2x1
jax: 0.10.0
libtpu: 0.0.40
codegen_flags: <defaults>
</compile_context>

<pallas_src>
import functools

import jax
import jax.numpy as jnp
from jax import lax
from jax.experimental import pallas as pl
from jax.experimental.pallas import tpu as pltpu


def _cdiv(a, b):
    return (a + b - 1) // b


def _round_up(x, m):
    return ((x + m - 1) // m) * m


# ----------------------------------------------------------------------------
# Kernels
# ----------------------------------------------------------------------------
def _mm_add_single_k_kernel(x1_ref, x2_ref, inp_ref, o_ref, *, precision):
    # Whole K reduction in one grid step: scratch-free, single fused store.
    o_ref[...] = (
        jnp.dot(x1_ref[...], x2_ref[...],
                preferred_element_type=jnp.float32, precision=precision)
        + inp_ref[...].astype(jnp.float32)
    ).astype(o_ref.dtype)


def _mask_k_tail(a, b, k_rem, tk):
    # Zero out the out-of-bounds K tail of the last K block (both operands, so
    # garbage (possibly inf/nan) from the OOB read can never reach valid output).
    limit = jnp.where(pl.program_id(2) == pl.num_programs(2) - 1, k_rem, tk)
    a = jnp.where(lax.broadcasted_iota(jnp.int32, a.shape, 1) < limit, a, 0.0)
    b = jnp.where(lax.broadcasted_iota(jnp.int32, b.shape, 0) < limit, b, 0.0)
    return a, b


def _mm_add_tiled_k_direct_kernel(x1_ref, x2_ref, inp_ref, o_ref, *,
                                  tk, k_rem, precision):
    # Grid (M/tm, N/tn, K/tk); K last ("arbitrary"). Output block is k-invariant
    # (VMEM-resident), so accumulate into it directly: no scratch, no final copy.
    k = pl.program_id(2)

    @pl.when(k == 0)
    def _():
        o_ref[...] = inp_ref[...].astype(o_ref.dtype)   # bias seeds accumulator

    a = x1_ref[...]
    b = x2_ref[...]
    if k_rem:  # static: tk does not divide K -> mask the ragged last K block
        a, b = _mask_k_tail(a, b, k_rem, tk)
    o_ref[...] += jnp.dot(a, b, preferred_element_type=jnp.float32,
                          precision=precision).astype(o_ref.dtype)


def _mm_add_tiled_k_scratch_kernel(x1_ref, x2_ref, inp_ref, o_ref, acc_ref, *,
                                   tk, k_rem, precision):
    # Variant with an f32 VMEM accumulator, used only for narrow output dtypes.
    k = pl.program_id(2)
    nk = pl.num_programs(2)

    @pl.when(k == 0)
    def _():
        acc_ref[...] = inp_ref[...].astype(jnp.float32)

    a = x1_ref[...]
    b = x2_ref[...]
    if k_rem:
        a, b = _mask_k_tail(a, b, k_rem, tk)
    acc_ref[...] += jnp.dot(a, b, preferred_element_type=jnp.float32,
                            precision=precision)

    @pl.when(k == nk - 1)
    def _():
        o_ref[...] = acc_ref[...].astype(o_ref.dtype)


# ----------------------------------------------------------------------------
# Wrapper
# ----------------------------------------------------------------------------
def mm_add(x1, x2, inp, *, tm_cap=256, tn_cap=512, tk_cap=1024, precision=None):
    """out = x1 @ x2 + inp  (x1: (M,K), x2: (K,N), inp broadcastable to (M,N))."""
    M, K = x1.shape
    K2, N = x2.shape
    assert K == K2, f"inner dims must match, got {K} vs {K2}"
    out_dtype = x1.dtype

    if inp.shape != (M, N):
        # torch-style broadcasting of the additive term (e.g. (N,) bias).
        inp = jnp.broadcast_to(inp, (M, N))

    # ---- tile selection (no HBM padding of any operand) --------------------
    # tm: full M for tiny M; otherwise split so the M axis has >= 2 blocks
    #     (keeps v7x's 2nd TensorCore busy); multiples of 8 for sublane tiling.
    if M > tm_cap:
        tm = tm_cap
    elif M >= 16:
        tm = min(tm_cap, _round_up(_cdiv(M, 2), 8))
    else:
        tm = M
    # tn: full N (block dim == array dim is always legal, lane-dense store) or cap.
    tn = N if N <= tn_cap else tn_cap
    # tk: single full-K block if it fits; else near-even 128-aligned split with
    #     the ragged tail masked in-kernel (no padding of K to a full tk multiple).
    if K <= tk_cap:
        tk, nk, k_rem = K, 1, 0
    else:
        tk = _round_up(_cdiv(K, _cdiv(K, tk_cap)), 128)
        nk = _cdiv(K, tk)
        k_rem = K % tk

    gm, gn = _cdiv(M, tm), _cdiv(N, tn)

    cost = pl.CostEstimate(
        flops=2 * M * N * K,
        transcendentals=0,
        bytes_accessed=(M * K + K * N + 2 * M * N) * jnp.dtype(out_dtype).itemsize,
    )

    if nk == 1:
        kernel = functools.partial(_mm_add_single_k_kernel, precision=precision)
        grid = (gm, gn)
        in_specs = [
            pl.BlockSpec((tm, tk), lambda i, j: (i, 0)),   # x1
            pl.BlockSpec((tk, tn), lambda i, j: (0, j)),   # x2
            pl.BlockSpec((tm, tn), lambda i, j: (i, j)),   # inp (bias)
        ]
        out_specs = pl.BlockSpec((tm, tn), lambda i, j: (i, j))
        scratch_shapes = []
        dim_sem = ("parallel", "parallel")
    else:
        direct = jnp.dtype(out_dtype) == jnp.float32
        body = _mm_add_tiled_k_direct_kernel if direct else _mm_add_tiled_k_scratch_kernel
        kernel = functools.partial(body, tk=tk, k_rem=k_rem, precision=precision)
        grid = (gm, gn, nk)
        in_specs = [
            pl.BlockSpec((tm, tk), lambda i, j, k: (i, k)),   # x1
            pl.BlockSpec((tk, tn), lambda i, j, k: (k, j)),   # x2
            pl.BlockSpec((tm, tn), lambda i, j, k: (i, j)),   # inp (bias)
        ]
        out_specs = pl.BlockSpec((tm, tn), lambda i, j, k: (i, j))
        scratch_shapes = [] if direct else [pltpu.VMEM((tm, tn), jnp.float32)]
        dim_sem = ("parallel", "parallel", "arbitrary")

    # Explicit VMEM budget: double-buffered operand/bias/output tiles (+ acc),
    # with headroom; clamped to [32 MiB, 64 MiB] so it is valid on v5e/v6e/v7x.
    itemsize = max(jnp.dtype(x1.dtype).itemsize, 4)
    vmem_need = 2 * (tm * tk + tk * tn + 2 * tm * tn) * itemsize \
        + (0 if nk == 1 else tm * tn * 4)
    vmem_limit = int(min(64 * 2**20, max(32 * 2**20, vmem_need * 5 // 4)))

    return pl.pallas_call(
        kernel,
        out_shape=jax.ShapeDtypeStruct((M, N), out_dtype),
        grid_spec=pltpu.PrefetchScalarGridSpec(
            num_scalar_prefetch=0,
            grid=grid,
            in_specs=in_specs,
            out_specs=out_specs,
            scratch_shapes=scratch_shapes,
        ),
        compiler_params=pltpu.CompilerParams(
            dimension_semantics=dim_sem,
            vmem_limit_bytes=vmem_limit,
        ),
        cost_estimate=cost,
    )(x1, x2, inp)


# ----------------------------------------------------------------------------
# Self-test
# ----------------------------------------------------------------------------
if __name__ == "__main__":
    keys = jax.random.split(jax.random.PRNGKey(0), 9)

    # Small shapes consistent with the module's forward (mm + add), scaled down
    # from the original (2333, 8888) x (8888, 777) + (777, ...) sizes.

    # Test 1: divisible shapes, single-K fast path, M split into 2 parallel blocks.
    M, K, N = 256, 512, 256
    x1 = jax.random.normal(keys[0], (M, K), dtype=jnp.float32)
    x2 = jax.random.normal(keys[1], (K, N), dtype=jnp.float32)
    b = jax.random.normal(keys[2], (M, N), dtype=jnp.float32)
    out = mm_add(x1, x2, b)
    jax.block_until_ready(out)
    ref = jnp.dot(x1, x2) + b
    assert out.shape == (M, N)
    assert jnp.allclose(out, ref, atol=1e-3, rtol=1e-3), \
        float(jnp.max(jnp.abs(out - ref)))

    # Test 2: ragged, non-128-aligned shapes; single-K (block == full K), no padding.
    M2, K2, N2 = 136, 600, 200
    y1 = jax.random.normal(keys[3], (M2, K2), dtype=jnp.float32)
    y2 = jax.random.normal(keys[4], (K2, N2), dtype=jnp.float32)
    yb = jax.random.normal(keys[5], (M2, N2), dtype=jnp.float32)
    out2 = mm_add(y1, y2, yb)
    jax.block_until_ready(out2)
    ref2 = jnp.dot(y1, y2) + yb
    assert out2.shape == (M2, N2)
    assert jnp.allclose(out2, ref2, atol=1e-3, rtol=1e-3), \
        float(jnp.max(jnp.abs(out2 - ref2)))

    # Test 3: force the tiled-K path (K > tk_cap) with an unaligned K tail ->
    # exercises direct o_ref accumulation + in-kernel K-tail masking (no jnp.pad).
    M3, K3, N3 = 64, 700, 256
    z1 = jax.random.normal(keys[6], (M3, K3), dtype=jnp.float32)
    z2 = jax.random.normal(keys[7], (K3, N3), dtype=jnp.float32)
    zb = jax.random.normal(keys[8], (M3, N3), dtype=jnp.float32)
    out3 = mm_add(z1, z2, zb, tk_cap=256)
    jax.block_until_ready(out3)
    ref3 = jnp.dot(z1, z2) + zb
    assert out3.shape == (M3, N3)
    assert jnp.allclose(out3, ref3, atol=1e-3, rtol=1e-3), \
        float(jnp.max(jnp.abs(out3 - ref3)))

    print("KERNEL_OK")
</pallas_src>

<mosaic_0001>
module attributes {stable_mosaic.version = 11 : i64} {
  func.func @_mm_add_single_k_kernel(%arg0: i32, %arg1: i32, %arg2: memref<128x512xf32, #tpu.memory_space<vmem>>, %arg3: memref<512x256xf32, #tpu.memory_space<vmem>>, %arg4: memref<128x256xf32, #tpu.memory_space<vmem>>, %arg5: memref<128x256xf32, #tpu.memory_space<vmem>>) attributes {dimension_semantics = [#tpu.dimension_semantics<parallel>, #tpu.dimension_semantics<parallel>], iteration_bounds = array<i64: 2, 1>, scalar_prefetch = 0 : i64, scratch_operands = 0 : i64, tpu.core_type = #tpu.core_type<tc>, window_params = [{transform_indices = @transform_0, window_bounds = array<i64: 128, 512>}, {transform_indices = @transform_1, window_bounds = array<i64: 512, 256>}, {transform_indices = @transform_2, window_bounds = array<i64: 128, 256>}, {transform_indices = @transform_3, window_bounds = array<i64: 128, 256>}]} {
    %c0 = arith.constant 0 : index
    %c0_0 = arith.constant 0 : index
    %0 = vector.load %arg2[%c0, %c0_0] : memref<128x512xf32, #tpu.memory_space<vmem>>, vector<128x512xf32>
    %c0_1 = arith.constant 0 : index
    %c0_2 = arith.constant 0 : index
    %1 = vector.load %arg3[%c0_1, %c0_2] : memref<512x256xf32, #tpu.memory_space<vmem>>, vector<512x256xf32>
    %cst = arith.constant dense<0.000000e+00> : vector<128x256xf32>
    %2 = tpu.matmul %0, %1, %cst {dimension_numbers = #tpu.dot_dimension_numbers<[1], [0], [0], [1], [0, 0, 1, 1], [], []>} : vector<128x512xf32>, vector<512x256xf32>, vector<128x256xf32> -> vector<128x256xf32>
    %c0_3 = arith.constant 0 : index
    %c0_4 = arith.constant 0 : index
    %3 = vector.load %arg4[%c0_3, %c0_4] : memref<128x256xf32, #tpu.memory_space<vmem>>, vector<128x256xf32>
    %4 = arith.addf %2, %3 : vector<128x256xf32>
    %c0_5 = arith.constant 0 : index
    %c0_6 = arith.constant 0 : index
    %5 = vector.load %arg5[%c0_5, %c0_6] : memref<128x256xf32, #tpu.memory_space<vmem>>, vector<128x256xf32>
    tpu.vector_store %arg5[%c0_5, %c0_6], %4 {strides = array<i32>} : memref<128x256xf32, #tpu.memory_space<vmem>>, vector<128x256xf32>,
    return
  }
  func.func @transform_0(%arg0: i32, %arg1: i32) -> (i32, i32) {
    %c0_i32 = arith.constant 0 : i32
    %c0_i32_0 = arith.constant 0 : i32
    return %arg0, %c0_i32 : i32, i32
  }
  func.func @transform_1(%arg0: i32, %arg1: i32) -> (i32, i32) {
    %c0_i32 = arith.constant 0 : i32
    %c0_i32_0 = arith.constant 0 : i32
    return %c0_i32, %arg1 : i32, i32
  }
  func.func @transform_2(%arg0: i32, %arg1: i32) -> (i32, i32) {
    %c0_i32 = arith.constant 0 : i32
    return %arg0, %arg1 : i32, i32
  }
  func.func @transform_3(%arg0: i32, %arg1: i32) -> (i32, i32) {
    %c0_i32 = arith.constant 0 : i32
    return %arg0, %arg1 : i32, i32
  }
}

</mosaic_0001>

<bundles_post_ra>
// kernel: tpu_custom_call.1
= control target key start
LH: loop header
LB: loop body
LE: loop exit
PB: predicated region body
PF: predicated region fallthrough
CT: control target
= control target key end

     0   :  { %8 = vsyncpa [#allocation3], 0  ;;  %s1651_s0 = inlined_call_operand.hbm [shape: f32[256,512], index: 0, kind: input, shape index: {}]   ;;  %s1652_s1 = inlined_call_operand.hbm [shape: f32[512,256], index: 1, kind: input, shape index: {}]   ;;  %s1653_s2 = inlined_call_operand.hbm [shape: f32[256,256], index: 2, kind: input, shape index: {}]   ;;  %s1654_s3 = inlined_call_operand.hbm [shape: f32[256,256], index: 3, kind: output, shape index: {}]  }
   0x1   :  { %10 = vsyncpa [#allocation3 + $0x1], 0 }
   0x2   :  { %11 = vsyncpa [#allocation6], 0 }
   0x3   :  { %12 = vsyncpa [#allocation4], 0 }
   0x4   :  { %14 = vsyncpa [#allocation4 + $0x1], 0  ;;  %s1305_s12 = smov 0   ;;  %s1307_s13 = smov 0  }
   0x5   :  { %s1309_s14 = smov 0   ;;  %s1311_s15 = smov 0  }
   0x6   :  { %s1313_s16 = smov 0   ;;  %s1315_s17 = smov 0  }
   0x7 LB: > { %s32_s18 = sadd.s32 1, %s1269_s16  ;;  %s39_s19 = sadd.s32 1, %s1261_s14  ;;  %s1273_s17 = sphi %s1315_s17, %s20_s17   ;;  %s1269_s16 = sphi %s1313_s16, %s1669_s16   ;;  %s1265_s15 = sphi %s1311_s15, %s1668_s15   ;;  %s1261_s14 = sphi %s1309_s14, %s1667_s14   ;;  %s1257_s13 = sphi %s1307_s13, %s1666_s13   ;;  %s1253_s12 = sphi %s1305_s12, %s1665_s12  }
   0x8   : > { %p34_p0 = scmp.ge.s32.totalorder %s32_s18, 2  ;;  %p46_p1 = scmp.ne.s32.totalorder %s1261_s14, %s1257_s13 }
   0x9   : > { %p47_p2 = scmp.eq.s32.totalorder %s1273_s17, 0  ;;  %p1045_p5 = scmp.lt.s32.totalorder %s1273_s17, 2 }
   0xa   : > { %s1671_s18 = smov (%p34_p0, %s32_s18), 0  ;;  %s174_s21 = sand.u32 1, %s1273_s17  }
   0xb   : > { %p48_p4 = por %p47_p2, %p46_p1  ;;  %s36_s20 = ssub.s32 %s1269_s16, %s1671_s18 }
   0xc   : > { %p37_p6 = scmp.eq.s32.totalorder %s36_s20, 0  ;;  %s176_s22 = sand.u32 1, %s1261_s14  }
   0xd   : > { %s1014_s23 = sshll.u32 %s1269_s16, 13  ;;  %s994_s25 = sshll.u32 %s176_s22, 9 }
   0xe   : > { %s1353_s24 = scalar_select %p37_p6, %s1261_s14, %s39_s19  }
   0xf   : > { %s185_s28 = scalar_lea.hbm %s1651_s0, %s1014_s23  ;;  %p1358_p7 = pnand %p1045_p5, %p48_p4 }
  0x10   : > { %s178_s30 = scalar_lea.vmem [#allocation2], %s994_s25  ;;  %s1362_s5 = sshll.u32 %s176_s22, 8 }
  0x11   : > { %s186_s4 = sshll.u32 %s178_s30, 4  ;;  %s1364_s6 = scalar_lea.sflag [#allocation3], %s174_s21  ;;  %s187_s4 = int_to_ptr.vmem [resolvable:$true] %s186_s4 }
  0x12   : > { %p1105_p8 = pneg %p1358_p7  ;;  %s1116_s7 = scalar_lea.vmem %s187_s4, 8192 }
  0x13   : > { %p1117_p9 = scmp.ne.s32.totalorder %s187_s4, %s1116_s7  ;;  %s1275_s8 = smov [#allocation2]  }
  0x14   : > { %s1121_s9 = sshll.u32 %s1275_s8, 4  ;;  %s1122_s9 = int_to_ptr.vmem [resolvable:$false] %s1121_s9 }
  0x15   : > { %p1119_p10 = pnand %p1117_p9, %p1105_p8  ;;  %s1123_s10 = scalar_lea.vmem %s1122_s9, 16384 }
  0x16   : > { %p1124_p12 = scmp.lt.s32.totalorder %s187_s4, %s1122_s9  ;;  %p1125_p13 = scmp.lt.s32.totalorder %s1123_s10, %s1116_s7 }
  0x17   : > { %p1120_p11 = pneg %p1119_p10 }
  0x18   : > { %p1126_p0 = por %p1125_p13, %p1124_p12 }
  0x1a   : > { %p1127_p2 = pnand %p1126_p0, %p1120_p11 }
  0x1c   : > { %1130 = shalt.err (!%p1127_p2)
}
  0x1d   : > { %s1276_s11 = smov 512   ;;  %s1277_s19 = smov 32  }
  0x1e   : > { %1036 = dma.hbm_to_vmem [thread:$0]  (!%p1358_p7), %s185_s28, 8192, %s187_s4, %s1364_s6, %s1276_s11, %s1276_s11, %s1277_s19  }
  0x1f   : > { %s1375_s20 = sadd.s32 4294967295, %s1273_s17   ;;  %s990_s21 = sadd.s32 4294967294, %s1273_s17  }
  0x20   : > { %p52_p4 = scmp.ne.s32.totalorder %s1257_s13, %s1253_s12  ;;  %p53_p5 = scmp.eq.s32.totalorder %s1375_s20, 0 }
  0x21   : > { %p132_p6 = scmp.eq.s32.totalorder %s1375_s20, 1  ;;  %p138_p9 = scmp.eq.s32.totalorder %s990_s21, 1 }
  0x22   : > { %p1384_p10 = por %p53_p5, %p52_p4  ;;  %p991_p11 = scmp.ge.s32.totalorder %s1273_s17, 1 }
  0x23   : > { %p1392_p12 = por %p132_p6, %p46_p1  ;;  %p1396_p13 = por %p138_p9, %p52_p4 }
  0x24   : > { %p145_p0 = scmp.lt.s32.totalorder %s1273_s17, 3  ;;  %s200_s26 = scalar_lea.vmem [#allocation7], %s1362_s5 }
  0x25   : > { %s1658_s23 = scalar_select %p1392_p12, 1, 0 }
  0x26   : > { %s1659_s25 = scalar_select %p1396_p13, 1, 0 }
  0x27   : > { %s210_s27 = sshll.u32 %s200_s26, 4  ;;  %p1402_p2 = pnand %p991_p11, %p145_p0  ;;  %s211_s27 = int_to_ptr.vmem [resolvable:$true] %s210_s27 }
  0x28   : > { %s1278_s30 = smov [#allocation5]   ;;  %s1016_s7 = sshll.u32 %s1269_s16, 12 }
  0x29   : > { %s160_s4 = sshll.u32 %s1278_s30, 4  ;;  %p1029_p1 = pneg %p1402_p2  ;;  %s1412_s4 = int_to_ptr.vmem [resolvable:$true] %s160_s4 }
  0x2a   : > { %s209_s10 = scalar_lea.hbm %s1653_s2, %s1016_s7  ;;  %s1144_s11 = scalar_lea.vmem %s211_s27, 4096 }
  0x2b   : > { %p1416_p4 = pnand %p1029_p1, %p53_p5  ;;  %p1145_p6 = scmp.ne.s32.totalorder %s211_s27, %s1144_s11 }
  0x2c   : > { %s1279_s19 = smov [#allocation7]  }
  0x2d   : > { %p1147_p9 = pnand %p1145_p6, %p1105_p8  ;;  %s1149_s21 = sshll.u32 %s1279_s19, 4  ;;  %s1150_s21 = int_to_ptr.vmem [resolvable:$false] %s1149_s21 }
  0x2e   : > { %s1151_s26 = scalar_lea.vmem %s1150_s21, 8192  ;;  %p1152_p0 = scmp.lt.s32.totalorder %s211_s27, %s1150_s21 }
  0x2f   : > { %p1148_p11 = pneg %p1147_p9  ;;  %p1153_p3 = scmp.lt.s32.totalorder %s1151_s26, %s1144_s11 }
  0x31   : > { %p1154_p13 = por %p1153_p3, %p1152_p0 }
  0x33   : > { %p1155_p12 = pnand %p1154_p13, %p1148_p11 }
  0x35   : > { %1158 = shalt.err (!%p1155_p12)
}
  0x36   : > { %s1280_s30 = smov 256   ;;  %s1281_s7 = smov 16  }
  0x37   : > { %1039 = dma.hbm_to_vmem [thread:$0]  (!%p1358_p7), %s209_s10, 4096, %s211_s27, %s1364_s6, %s1280_s30, %s1280_s30, %s1281_s7  }
  0x38   : > { %p1161_p8 = pneg %p1416_p4  ;;  %s1170_s8 = scalar_lea.vmem %s1412_s4, 16384 }
  0x39   : > { %p1171_p1 = scmp.ne.s32.totalorder %s1412_s4, %s1170_s8  ;;  %p1178_p3 = scmp.lt.s32.totalorder %s1412_s4, %s1412_s4 }
  0x3a   : > { %p1179_p13 = scmp.lt.s32.totalorder %s1170_s8, %s1170_s8 }
  0x3b   : > { %p1173_p6 = pnand %p1171_p1, %p1161_p8 }
  0x3c   : > { %p1180_p12 = por %p1179_p13, %p1178_p3 }
  0x3d   : > { %p1174_p9 = pneg %p1173_p6 }
  0x3f   : > { %p1181_p11 = pnand %p1180_p12, %p1174_p9 }
  0x41   : > { %1184 = shalt.err (!%p1181_p11)
}
  0x42   : > { %1032 = dma.hbm_to_vmem [thread:$0]  (!%p1416_p4), %s1652_s1, 16384, %s1412_s4, [#allocation6], %s1280_s30, %s1280_s30, %s1281_s7  }
  0x43   : > { %222 = sbr.rel (%p1402_p2) target bundleno = 417 (0x1a1), region = 32  ;;  %s224_s29 = sand.u32 (!%p1402_p2), 1, %s1375_s20  }
  0x44   : > { %s1442_s6 = sand.u32 (!%p1402_p2), 1, %s1257_s13   ;;  %s225_s10 = scalar_lea.sflag (!%p1402_p2), [#allocation3], %s224_s29 }
  0x45   : > { %s1003_s27 = sshll.u32 (!%p1402_p2), %s1442_s6, 9 }
  0x46   : > { %s1445_s19 = scalar_lea.vmem (!%p1402_p2), [#allocation2], %s1003_s27 }
  0x48   : > { %1236 = dma.done.wait (%p1384_p10), %s225_s10, 8192  }
  0x49   : > { %1238 = vsyncadd (%p1384_p10), %s225_s10, 4294959104 }
  0x4a   : > { %1240 = dma.done.wait (%p53_p5), [#allocation6], 16384  }
  0x4b   : > { %1242 = vsyncadd (%p53_p5), [#allocation6], 4294950912  ;;  %s1005_s28 = sshll.u32 %s1442_s6, 8 }
  0x4c   : > { %s1458_s4 = scalar_lea.vmem [#allocation7], %s1005_s28 }
  0x4d   : > { %1244 = dma.done.wait (%p1384_p10), %s225_s10, 4096  }
  0x4e   : > { %1246 = vsyncadd (%p1384_p10), %s225_s10, 4294963200  ;;  %v370_v0 = vld [vmem:[#allocation5 + $0xf8] sm:$0xff]  ;;  %v369_v2 = vld [vmem:[#allocation5 + $0xf0] sm:$0xff]  ;;  %s1534_s20 = scalar_lea.vmem [#allocation8], %s1005_s28  ;;  %s1018_s22 = sshll.u32 %s1265_s15, 12 }
  0x4f   : > { %v434_v1 = vld [vmem:[#allocation5 + $0x2f8] sm:$0xff]  ;;  %499 = vmatprep.subr.mxu0 %v370_v0  ;;  %v433_v3 = vld [vmem:[#allocation5 + $0x2f0] sm:$0xff]  ;;  %v368_v4 = vld [vmem:[#allocation5 + $0xe8] sm:$0xff]  ;;  %s870_s5 = sshll.u32 %s1534_s20, 4  ;;  %s1599_s30 = scalar_lea.hbm %s1654_s3, %s1018_s22  ;;  %s1601_s5 = int_to_ptr.vmem [resolvable:$true] %s870_s5 }
  0x50   : > { %660 = vmatprep.subr.mxu1 %v434_v1  ;;  %v432_v5 = vld [vmem:[#allocation5 + $0x2e8] sm:$0xff]  ;;  %500 = vmatpush1.msra.mxu0 %v369_v2  ;;  %v367_v6 = vld [vmem:[#allocation5 + $0xe0] sm:$0xff]  ;;  %v366_v8 = vld [vmem:[#allocation5 + $0xd8] sm:$0xff]  ;;  %s854_s15 = scalar_lea.sflag [#allocation4], %s1442_s6  ;;  %s1185_s7 = scalar_lea.vmem %s1601_s5, 4096 }
  0x51   : > { %661 = vmatpush1.msra.mxu1 %v433_v3  ;;  %v431_v7 = vld [vmem:[#allocation5 + $0x2e0] sm:$0xff]  ;;  %501 = vmatprep.subr.mxu0 %v368_v4  ;;  %v430_v9 = vld [vmem:[#allocation5 + $0x2d8] sm:$0xff]  ;;  %v365_v10 = vld [vmem:[#allocation5 + $0xd0] sm:$0xff]  ;;  %p1186_p7 = scmp.ne.s32.totalorder %s1601_s5, %s1185_s7  ;;  %p1662_p5 = scmp.ne.s32.totalorder %s1658_s23, 0 }
  0x52   : > { %662 = vmatprep.subr.mxu1 %v432_v5  ;;  %v429_v11 = vld [vmem:[#allocation5 + $0x2d0] sm:$0xff]  ;;  %502 = vmatpush1.msra.mxu0 %v367_v6  ;;  %v364_v12 = vld [vmem:[#allocation5 + $0xc8] sm:$0xff]  ;;  %v363_v14 = vld [vmem:[#allocation5 + $0xc0] sm:$0xff]  ;;  %s1282_s8 = smov [#allocation8]  }
  0x53   : > { %663 = vmatpush1.msra.mxu1 %v431_v7  ;;  %v428_v13 = vld [vmem:[#allocation5 + $0x2c8] sm:$0xff]  ;;  %503 = vmatprep.subr.mxu0 %v366_v8  ;;  %v427_v15 = vld [vmem:[#allocation5 + $0x2c0] sm:$0xff]  ;;  %v362_v16 = vld [vmem:[#allocation5 + $0xb8] sm:$0xff]  ;;  %p1187_p10 = pnand %p1186_p7, %p1662_p5  ;;  %s1189_s9 = sshll.u32 %s1282_s8, 4  ;;  %s1190_s9 = int_to_ptr.vmem [resolvable:$false] %s1189_s9 }
  0x54   : > { %664 = vmatprep.subr.mxu1 %v430_v9  ;;  %504 = vmatpush1.msra.mxu0 %v365_v10  ;;  %v426_v17 = vld [vmem:[#allocation5 + $0x2b8] sm:$0xff]  ;;  %v361_v18 = vld [vmem:[#allocation5 + $0xb0] sm:$0xff]  ;;  %v360_v20 = vld [vmem:[#allocation5 + $0xa8] sm:$0xff]  ;;  %s1191_s11 = scalar_lea.vmem %s1190_s9, 8192  ;;  %p1192_p4 = scmp.lt.s32.totalorder %s1601_s5, %s1190_s9 }
  0x55   : > { %665 = vmatpush1.msra.mxu1 %v429_v11  ;;  %505 = vmatprep.subr.mxu0 %v364_v12  ;;  %v425_v19 = vld [vmem:[#allocation5 + $0x2b0] sm:$0xff]  ;;  %v424_v21 = vld [vmem:[#allocation5 + $0x2a8] sm:$0xff]  ;;  %v359_v22 = vld [vmem:[#allocation5 + $0xa0] sm:$0xff]  ;;  %p1188_p2 = pneg %p1187_p10  ;;  %p1193_p0 = scmp.lt.s32.totalorder %s1191_s11, %s1185_s7 }
  0x56   : > { %666 = vmatprep.subr.mxu1 %v428_v13  ;;  %506 = vmatpush1.msra.mxu0 %v363_v14  ;;  %v423_v23 = vld [vmem:[#allocation5 + $0x2a0] sm:$0xff]  ;;  %v358_v24 = vld [vmem:[#allocation5 + $0x98] sm:$0xff]  ;;  %v357_v26 = vld [vmem:[#allocation5 + $0x90] sm:$0xff] }
  0x57   : > { %667 = vmatpush1.msra.mxu1 %v427_v15  ;;  %507 = vmatprep.subr.mxu0 %v362_v16  ;;  %v422_v25 = vld [vmem:[#allocation5 + $0x298] sm:$0xff]  ;;  %v421_v27 = vld [vmem:[#allocation5 + $0x290] sm:$0xff]  ;;  %v356_v28 = vld [vmem:[#allocation5 + $0x88] sm:$0xff]  ;;  %p1194_p8 = por %p1193_p0, %p1192_p4 }
  0x58   : > { %668 = vmatprep.subr.mxu1 %v426_v17  ;;  %508 = vmatpush1.msra.mxu0 %v361_v18  ;;  %v420_v29 = vld [vmem:[#allocation5 + $0x288] sm:$0xff]  ;;  %v355_v30 = vld [vmem:[#allocation5 + $0x80] sm:$0xff]  ;;  %v354_v32 = vld [vmem:[#allocation5 + $0x78] sm:$0xff] }
  0x59   : > { %669 = vmatpush1.msra.mxu1 %v425_v19  ;;  %509 = vmatprep.subr.mxu0 %v360_v20  ;;  %v419_v31 = vld [vmem:[#allocation5 + $0x280] sm:$0xff]  ;;  %v418_v33 = vld [vmem:[#allocation5 + $0x278] sm:$0xff]  ;;  %v353_v34 = vld [vmem:[#allocation5 + $0x70] sm:$0xff]  ;;  %p1195_p1 = pnand %p1194_p8, %p1188_p2 }
  0x5a   : > { %670 = vmatprep.subr.mxu1 %v424_v21  ;;  %510 = vmatpush1.msra.mxu0 %v359_v22  ;;  %v417_v35 = vld [vmem:[#allocation5 + $0x270] sm:$0xff]  ;;  %v352_v36 = vld [vmem:[#allocation5 + $0x68] sm:$0xff]  ;;  %v351_v38 = vld [vmem:[#allocation5 + $0x60] sm:$0xff] }
  0x5b   : > { %671 = vmatpush1.msra.mxu1 %v423_v23  ;;  %511 = vmatprep.subr.mxu0 %v358_v24  ;;  %v416_v37 = vld [vmem:[#allocation5 + $0x268] sm:$0xff]  ;;  %v415_v39 = vld [vmem:[#allocation5 + $0x260] sm:$0xff]  ;;  %v350_v40 = vld [vmem:[#allocation5 + $0x58] sm:$0xff] }
  0x5c   : > { %672 = vmatprep.subr.mxu1 %v422_v25  ;;  %512 = vmatpush1.msra.mxu0 %v357_v26  ;;  %v414_v41 = vld [vmem:[#allocation5 + $0x258] sm:$0xff]  ;;  %v349_v42 = vld [vmem:[#allocation5 + $0x50] sm:$0xff]  ;;  %v348_v44 = vld [vmem:[#allocation5 + $0x48] sm:$0xff] }
  0x5d   : > { %673 = vmatpush1.msra.mxu1 %v421_v27  ;;  %513 = vmatprep.subr.mxu0 %v356_v28  ;;  %v413_v43 = vld [vmem:[#allocation5 + $0x250] sm:$0xff]  ;;  %v412_v45 = vld [vmem:[#allocation5 + $0x248] sm:$0xff]  ;;  %v347_v46 = vld [vmem:[#allocation5 + $0x40] sm:$0xff] }
  0x5e   : > { %674 = vmatprep.subr.mxu1 %v420_v29  ;;  %514 = vmatpush1.msra.mxu0 %v355_v30  ;;  %v411_v47 = vld [vmem:[#allocation5 + $0x240] sm:$0xff]  ;;  %v346_v48 = vld [vmem:[#allocation5 + $0x38] sm:$0xff]  ;;  %v345_v50 = vld [vmem:[#allocation5 + $0x30] sm:$0xff] }
  0x5f   : > { %675 = vmatpush1.msra.mxu1 %v419_v31  ;;  %515 = vmatprep.subr.mxu0 %v354_v32  ;;  %v410_v49 = vld [vmem:[#allocation5 + $0x238] sm:$0xff]  ;;  %v409_v51 = vld [vmem:[#allocation5 + $0x230] sm:$0xff]  ;;  %v344_v52 = vld [vmem:[#allocation5 + $0x28] sm:$0xff] }
  0x60   : > { %676 = vmatprep.subr.mxu1 %v418_v33  ;;  %516 = vmatpush1.msra.mxu0 %v353_v34  ;;  %v408_v53 = vld [vmem:[#allocation5 + $0x228] sm:$0xff]  ;;  %v343_v54 = vld [vmem:[#allocation5 + $0x20] sm:$0xff]  ;;  %v342_v56 = vld [vmem:[#allocation5 + $0x18] sm:$0xff] }
  0x61   : > { %677 = vmatpush1.msra.mxu1 %v417_v35  ;;  %517 = vmatprep.subr.mxu0 %v352_v36  ;;  %v407_v55 = vld [vmem:[#allocation5 + $0x220] sm:$0xff]  ;;  %v406_v57 = vld [vmem:[#allocation5 + $0x218] sm:$0xff]  ;;  %v341_v58 = vld [vmem:[#allocation5 + $0x10] sm:$0xff] }
  0x62   : > { %678 = vmatprep.subr.mxu1 %v416_v37  ;;  %518 = vmatpush1.msra.mxu0 %v351_v38  ;;  %v405_v59 = vld [vmem:[#allocation5 + $0x210] sm:$0xff]  ;;  %v340_v60 = vld [vmem:[#allocation5 + $0x8] sm:$0xff]  ;;  %v339_v62 = vld [vmem:[#allocation5] sm:$0xff] }
  0x63   : > { %679 = vmatpush1.msra.mxu1 %v415_v39  ;;  %519 = vmatprep.subr.mxu0 %v350_v40  ;;  %v404_v61 = vld [vmem:[#allocation5 + $0x208] sm:$0xff]  ;;  %v403_v63 = vld [vmem:[#allocation5 + $0x200] sm:$0xff]  ;;  %v402_v0 = vld [vmem:[#allocation5 + $0x1f8] sm:$0xff] }
  0x64   : > { %680 = vmatprep.subr.mxu1 %v414_v41  ;;  %520 = vmatpush1.msra.mxu0 %v349_v42  ;;  %v466_v1 = vld [vmem:[#allocation5 + $0x3f8] sm:$0xff]  ;;  %v401_v2 = vld [vmem:[#allocation5 + $0x1f0] sm:$0xff]  ;;  %v400_v4 = vld [vmem:[#allocation5 + $0x1e8] sm:$0xff] }
  0x65   : > { %681 = vmatpush1.msra.mxu1 %v413_v43  ;;  %521 = vmatprep.subr.mxu0 %v348_v44  ;;  %v465_v3 = vld [vmem:[#allocation5 + $0x3f0] sm:$0xff]  ;;  %v464_v5 = vld [vmem:[#allocation5 + $0x3e8] sm:$0xff]  ;;  %v399_v6 = vld [vmem:[#allocation5 + $0x1e0] sm:$0xff] }
  0x66   : > { %682 = vmatprep.subr.mxu1 %v412_v45  ;;  %522 = vmatpush1.msra.mxu0 %v347_v46  ;;  %v463_v7 = vld [vmem:[#allocation5 + $0x3e0] sm:$0xff]  ;;  %v398_v8 = vld [vmem:[#allocation5 + $0x1d8] sm:$0xff]  ;;  %v397_v10 = vld [vmem:[#allocation5 + $0x1d0] sm:$0xff] }
  0x67   : > { %683 = vmatpush1.msra.mxu1 %v411_v47  ;;  %523 = vmatprep.subr.mxu0 %v346_v48  ;;  %v462_v9 = vld [vmem:[#allocation5 + $0x3d8] sm:$0xff]  ;;  %v461_v11 = vld [vmem:[#allocation5 + $0x3d0] sm:$0xff]  ;;  %v396_v12 = vld [vmem:[#allocation5 + $0x1c8] sm:$0xff] }
  0x68   : > { %684 = vmatprep.subr.mxu1 %v410_v49  ;;  %524 = vmatpush1.msra.mxu0 %v345_v50  ;;  %v460_v13 = vld [vmem:[#allocation5 + $0x3c8] sm:$0xff]  ;;  %v395_v14 = vld [vmem:[#allocation5 + $0x1c0] sm:$0xff]  ;;  %v394_v16 = vld [vmem:[#allocation5 + $0x1b8] sm:$0xff] }
  0x69   : > { %685 = vmatpush1.msra.mxu1 %v409_v51  ;;  %525 = vmatprep.subr.mxu0 %v344_v52  ;;  %v459_v15 = vld [vmem:[#allocation5 + $0x3c0] sm:$0xff]  ;;  %v458_v17 = vld [vmem:[#allocation5 + $0x3b8] sm:$0xff]  ;;  %v393_v18 = vld [vmem:[#allocation5 + $0x1b0] sm:$0xff] }
  0x6a   : > { %686 = vmatprep.subr.mxu1 %v408_v53  ;;  %526 = vmatpush1.msra.mxu0 %v343_v54  ;;  %v457_v19 = vld [vmem:[#allocation5 + $0x3b0] sm:$0xff]  ;;  %v392_v20 = vld [vmem:[#allocation5 + $0x1a8] sm:$0xff]  ;;  %v391_v22 = vld [vmem:[#allocation5 + $0x1a0] sm:$0xff] }
  0x6b   : > { %687 = vmatpush1.msra.mxu1 %v407_v55  ;;  %527 = vmatprep.subr.mxu0 %v342_v56  ;;  %v456_v21 = vld [vmem:[#allocation5 + $0x3a8] sm:$0xff]  ;;  %v455_v23 = vld [vmem:[#allocation5 + $0x3a0] sm:$0xff]  ;;  %v390_v24 = vld [vmem:[#allocation5 + $0x198] sm:$0xff] }
  0x6c   : > { %688 = vmatprep.subr.mxu1 %v406_v57  ;;  %528 = vmatpush1.msra.mxu0 %v341_v58  ;;  %v454_v25 = vld [vmem:[#allocation5 + $0x398] sm:$0xff]  ;;  %v389_v26 = vld [vmem:[#allocation5 + $0x190] sm:$0xff]  ;;  %v388_v28 = vld [vmem:[#allocation5 + $0x188] sm:$0xff] }
  0x6d   : > { %689 = vmatpush1.msra.mxu1 %v405_v59  ;;  %529 = vmatprep.subr.mxu0 %v340_v60  ;;  %v453_v27 = vld [vmem:[#allocation5 + $0x390] sm:$0xff]  ;;  %v452_v29 = vld [vmem:[#allocation5 + $0x388] sm:$0xff]  ;;  %v387_v30 = vld [vmem:[#allocation5 + $0x180] sm:$0xff] }
  0x6e   : > { %690 = vmatprep.subr.mxu1 %v404_v61  ;;  %530 = vmatpush1.msra.mxu0 %v339_v62  ;;  %v451_v31 = vld [vmem:[#allocation5 + $0x380] sm:$0xff]  ;;  %v386_v32 = vld [vmem:[#allocation5 + $0x178] sm:$0xff]  ;;  %v385_v34 = vld [vmem:[#allocation5 + $0x170] sm:$0xff] }
  0x6f   : > { %691 = vmatpush1.msra.mxu1 %v403_v63  ;;  %531 = vmatprep.subr.mxu0 %v402_v0  ;;  %v450_v33 = vld [vmem:[#allocation5 + $0x378] sm:$0xff]  ;;  %v449_v35 = vld [vmem:[#allocation5 + $0x370] sm:$0xff]  ;;  %v384_v36 = vld [vmem:[#allocation5 + $0x168] sm:$0xff] }
  0x70   : > { %692 = vmatprep.subr.mxu1 %v466_v1  ;;  %532 = vmatpush2.msra.mxu0 %v401_v2  ;;  %v448_v37 = vld [vmem:[#allocation5 + $0x368] sm:$0xff]  ;;  %v383_v38 = vld [vmem:[#allocation5 + $0x160] sm:$0xff]  ;;  %v382_v40 = vld [vmem:[#allocation5 + $0x158] sm:$0xff] }
  0x71   : > { %693 = vmatpush2.msra.mxu1 %v465_v3  ;;  %533 = vmatprep.subr.mxu0 %v400_v4  ;;  %v447_v39 = vld [vmem:[#allocation5 + $0x360] sm:$0xff]  ;;  %v446_v41 = vld [vmem:[#allocation5 + $0x358] sm:$0xff]  ;;  %v381_v42 = vld [vmem:[#allocation5 + $0x150] sm:$0xff] }
  0x72   : > { %694 = vmatprep.subr.mxu1 %v464_v5  ;;  %534 = vmatpush2.msra.mxu0 %v399_v6  ;;  %v445_v43 = vld [vmem:[#allocation5 + $0x350] sm:$0xff]  ;;  %v380_v44 = vld [vmem:[#allocation5 + $0x148] sm:$0xff]  ;;  %v379_v46 = vld [vmem:[#allocation5 + $0x140] sm:$0xff] }
  0x73   : > { %695 = vmatpush2.msra.mxu1 %v463_v7  ;;  %535 = vmatprep.subr.mxu0 %v398_v8  ;;  %v444_v45 = vld [vmem:[#allocation5 + $0x348] sm:$0xff]  ;;  %v443_v47 = vld [vmem:[#allocation5 + $0x340] sm:$0xff]  ;;  %v378_v48 = vld [vmem:[#allocation5 + $0x138] sm:$0xff] }
  0x74   : > { %696 = vmatprep.subr.mxu1 %v462_v9  ;;  %536 = vmatpush2.msra.mxu0 %v397_v10  ;;  %v442_v49 = vld [vmem:[#allocation5 + $0x338] sm:$0xff]  ;;  %v377_v50 = vld [vmem:[#allocation5 + $0x130] sm:$0xff]  ;;  %v376_v52 = vld [vmem:[#allocation5 + $0x128] sm:$0xff] }
  0x75   : > { %697 = vmatpush2.msra.mxu1 %v461_v11  ;;  %537 = vmatprep.subr.mxu0 %v396_v12  ;;  %v441_v51 = vld [vmem:[#allocation5 + $0x330] sm:$0xff]  ;;  %v440_v53 = vld [vmem:[#allocation5 + $0x328] sm:$0xff]  ;;  %v375_v54 = vld [vmem:[#allocation5 + $0x120] sm:$0xff] }
  0x76   : > { %698 = vmatprep.subr.mxu1 %v460_v13  ;;  %538 = vmatpush2.msra.mxu0 %v395_v14  ;;  %v439_v55 = vld [vmem:[#allocation5 + $0x320] sm:$0xff]  ;;  %v374_v56 = vld [vmem:[#allocation5 + $0x118] sm:$0xff]  ;;  %v373_v58 = vld [vmem:[#allocation5 + $0x110] sm:$0xff] }
  0x77   : > { %699 = vmatpush2.msra.mxu1 %v459_v15  ;;  %539 = vmatprep.subr.mxu0 %v394_v16  ;;  %v438_v57 = vld [vmem:[#allocation5 + $0x318] sm:$0xff]  ;;  %v437_v59 = vld [vmem:[#allocation5 + $0x310] sm:$0xff]  ;;  %v372_v60 = vld [vmem:[#allocation5 + $0x108] sm:$0xff] }
  0x78   : > { %700 = vmatprep.subr.mxu1 %v458_v17  ;;  %540 = vmatpush2.msra.mxu0 %v393_v18  ;;  %v436_v61 = vld [vmem:[#allocation5 + $0x308] sm:$0xff]  ;;  %v371_v62 = vld [vmem:[#allocation5 + $0x100] sm:$0xff]  ;;  %v278_v1 = vld [vmem:[%s1445_s19 + $0x18] sm:$0xff] }
  0x79   : > { %701 = vmatpush2.msra.mxu1 %v457_v19  ;;  %541 = vmatprep.subr.mxu0 %v392_v20  ;;  %v276_v63 = vld [vmem:[%s1445_s19 + $0x8] sm:$0xff]  ;;  %v435_v0 = vld [vmem:[#allocation5 + $0x300] sm:$0xff]  ;;  %v277_v3 = vld [vmem:[%s1445_s19 + $0x10] sm:$0xff] }
  0x7a   : > { %702 = vmatprep.subr.mxu1 %v456_v21  ;;  %542 = vmatpush2.msra.mxu0 %v391_v22  ;;  %v275_v2 = vld [vmem:[%s1445_s19] sm:$0xff]  ;;  %v280_v4 = vld [vmem:[%s1445_s19 + $0x28] sm:$0xff]  ;;  %v282_v5 = vld [vmem:[%s1445_s19 + $0x38] sm:$0xff] }
  0x7b   : > { %703 = vmatpush2.msra.mxu1 %v455_v23  ;;  %543 = vmatprep.subr.mxu0 %v390_v24  ;;  %v279_v6 = vld [vmem:[%s1445_s19 + $0x20] sm:$0xff]  ;;  %v281_v7 = vld [vmem:[%s1445_s19 + $0x30] sm:$0xff]  ;;  %v284_v8 = vld [vmem:[%s1445_s19 + $0x48] sm:$0xff] }
  0x7c   : > { %704 = vmatprep.subr.mxu1 %v454_v25  ;;  %544 = vmatpush2.msra.mxu0 %v389_v26  ;;  %v286_v9 = vld [vmem:[%s1445_s19 + $0x58] sm:$0xff]  ;;  %v283_v10 = vld [vmem:[%s1445_s19 + $0x40] sm:$0xff]  ;;  %v285_v11 = vld [vmem:[%s1445_s19 + $0x50] sm:$0xff] }
  0x7d   : > { %705 = vmatpush2.msra.mxu1 %v453_v27  ;;  %545 = vmatprep.subr.mxu0 %v388_v28  ;;  %v288_v12 = vld [vmem:[%s1445_s19 + $0x68] sm:$0xff]  ;;  %v290_v13 = vld [vmem:[%s1445_s19 + $0x78] sm:$0xff]  ;;  %v287_v14 = vld [vmem:[%s1445_s19 + $0x60] sm:$0xff] }
  0x7e   : > { %706 = vmatprep.subr.mxu1 %v452_v29  ;;  %546 = vmatpush2.msra.mxu0 %v387_v30  ;;  %v289_v15 = vld [vmem:[%s1445_s19 + $0x70] sm:$0xff]  ;;  %v292_v16 = vld [vmem:[%s1445_s19 + $0x88] sm:$0xff]  ;;  %v294_v17 = vld [vmem:[%s1445_s19 + $0x98] sm:$0xff] }
  0x7f   : > { %707 = vmatpush2.msra.mxu1 %v451_v31  ;;  %547 = vmatprep.subr.mxu0 %v386_v32  ;;  %v291_v18 = vld [vmem:[%s1445_s19 + $0x80] sm:$0xff]  ;;  %v293_v19 = vld [vmem:[%s1445_s19 + $0x90] sm:$0xff]  ;;  %v296_v20 = vld [vmem:[%s1445_s19 + $0xa8] sm:$0xff] }
  0x80   : > { %708 = vmatprep.subr.mxu1 %v450_v33  ;;  %548 = vmatpush2.msra.mxu0 %v385_v34  ;;  %v298_v21 = vld [vmem:[%s1445_s19 + $0xb8] sm:$0xff]  ;;  %v295_v22 = vld [vmem:[%s1445_s19 + $0xa0] sm:$0xff]  ;;  %v297_v23 = vld [vmem:[%s1445_s19 + $0xb0] sm:$0xff] }
  0x81   : > { %709 = vmatpush2.msra.mxu1 %v449_v35  ;;  %549 = vmatprep.subr.mxu0 %v384_v36  ;;  %v300_v24 = vld [vmem:[%s1445_s19 + $0xc8] sm:$0xff]  ;;  %v302_v25 = vld [vmem:[%s1445_s19 + $0xd8] sm:$0xff]  ;;  %v299_v26 = vld [vmem:[%s1445_s19 + $0xc0] sm:$0xff] }
  0x82   : > { %710 = vmatprep.subr.mxu1 %v448_v37  ;;  %550 = vmatpush2.msra.mxu0 %v383_v38  ;;  %v301_v27 = vld [vmem:[%s1445_s19 + $0xd0] sm:$0xff]  ;;  %v304_v28 = vld [vmem:[%s1445_s19 + $0xe8] sm:$0xff]  ;;  %v306_v29 = vld [vmem:[%s1445_s19 + $0xf8] sm:$0xff] }
  0x83   : > { %711 = vmatpush2.msra.mxu1 %v447_v39  ;;  %551 = vmatprep.subr.mxu0 %v382_v40  ;;  %v303_v30 = vld [vmem:[%s1445_s19 + $0xe0] sm:$0xff]  ;;  %v305_v31 = vld [vmem:[%s1445_s19 + $0xf0] sm:$0xff]  ;;  %v308_v32 = vld [vmem:[%s1445_s19 + $0x108] sm:$0xff] }
  0x84   : > { %712 = vmatprep.subr.mxu1 %v446_v41  ;;  %552 = vmatpush2.msra.mxu0 %v381_v42  ;;  %v310_v33 = vld [vmem:[%s1445_s19 + $0x118] sm:$0xff]  ;;  %v307_v34 = vld [vmem:[%s1445_s19 + $0x100] sm:$0xff]  ;;  %v309_v35 = vld [vmem:[%s1445_s19 + $0x110] sm:$0xff] }
  0x85   : > { %713 = vmatpush2.msra.mxu1 %v445_v43  ;;  %553 = vmatprep.subr.mxu0 %v380_v44  ;;  %v312_v36 = vld [vmem:[%s1445_s19 + $0x128] sm:$0xff]  ;;  %v314_v37 = vld [vmem:[%s1445_s19 + $0x138] sm:$0xff]  ;;  %v311_v38 = vld [vmem:[%s1445_s19 + $0x120] sm:$0xff] }
  0x86   : > { %714 = vmatprep.subr.mxu1 %v444_v45  ;;  %554 = vmatpush2.msra.mxu0 %v379_v46  ;;  %v313_v39 = vld [vmem:[%s1445_s19 + $0x130] sm:$0xff]  ;;  %v316_v40 = vld [vmem:[%s1445_s19 + $0x148] sm:$0xff]  ;;  %v318_v41 = vld [vmem:[%s1445_s19 + $0x158] sm:$0xff] }
  0x87   : > { %715 = vmatpush2.msra.mxu1 %v443_v47  ;;  %555 = vmatprep.subr.mxu0 %v378_v48  ;;  %v315_v42 = vld [vmem:[%s1445_s19 + $0x140] sm:$0xff]  ;;  %v317_v43 = vld [vmem:[%s1445_s19 + $0x150] sm:$0xff]  ;;  %v320_v44 = vld [vmem:[%s1445_s19 + $0x168] sm:$0xff] }
  0x88   : > { %716 = vmatprep.subr.mxu1 %v442_v49  ;;  %556 = vmatpush2.msra.mxu0 %v377_v50  ;;  %v322_v45 = vld [vmem:[%s1445_s19 + $0x178] sm:$0xff]  ;;  %v319_v46 = vld [vmem:[%s1445_s19 + $0x160] sm:$0xff]  ;;  %v321_v47 = vld [vmem:[%s1445_s19 + $0x170] sm:$0xff] }
  0x89   : > { %717 = vmatpush2.msra.mxu1 %v441_v51  ;;  %557 = vmatprep.subr.mxu0 %v376_v52  ;;  %v324_v48 = vld [vmem:[%s1445_s19 + $0x188] sm:$0xff]  ;;  %v326_v49 = vld [vmem:[%s1445_s19 + $0x198] sm:$0xff]  ;;  %v323_v50 = vld [vmem:[%s1445_s19 + $0x180] sm:$0xff] }
  0x8a   : > { %718 = vmatprep.subr.mxu1 %v440_v53  ;;  %558 = vmatpush2.msra.mxu0 %v375_v54  ;;  %v325_v51 = vld [vmem:[%s1445_s19 + $0x190] sm:$0xff]  ;;  %v328_v52 = vld [vmem:[%s1445_s19 + $0x1a8] sm:$0xff]  ;;  %v330_v53 = vld [vmem:[%s1445_s19 + $0x1b8] sm:$0xff] }
  0x8b   : > { %719 = vmatpush2.msra.mxu1 %v439_v55  ;;  %559 = vmatprep.subr.mxu0 %v374_v56  ;;  %v327_v54 = vld [vmem:[%s1445_s19 + $0x1a0] sm:$0xff]  ;;  %v329_v55 = vld [vmem:[%s1445_s19 + $0x1b0] sm:$0xff]  ;;  %v332_v56 = vld [vmem:[%s1445_s19 + $0x1c8] sm:$0xff] }
  0x8c   : > { %720 = vmatprep.subr.mxu1 %v438_v57  ;;  %560 = vmatpush2.msra.mxu0 %v373_v58  ;;  %v334_v57 = vld [vmem:[%s1445_s19 + $0x1d8] sm:$0xff]  ;;  %v331_v58 = vld [vmem:[%s1445_s19 + $0x1c0] sm:$0xff] }
  0x8d   : > { %721 = vmatpush2.msra.mxu1 %v437_v59  ;;  %561 = vmatprep.subr.mxu0 %v372_v60  ;;  %v333_v59 = vld [vmem:[%s1445_s19 + $0x1d0] sm:$0xff]  ;;  %v336_v60 = vld [vmem:[%s1445_s19 + $0x1e8] sm:$0xff] }
  0x8e   : > { %722 = vmatprep.subr.mxu1 %v436_v61  ;;  %562 = vmatpush2.msra.mxu0 %v371_v62  ;;  %v338_v61 = vld [vmem:[%s1445_s19 + $0x1f8] sm:$0xff]  ;;  %v335_v62 = vld [vmem:[%s1445_s19 + $0x1e0] sm:$0xff] }
  0x8f   : > { %563 = vmatprep.mubr.f32.mxu0 %v276_v63  ;;  %723 = vmatpush2.msra.mxu1 %v435_v0  ;;  %v337_v63 = vld [vmem:[%s1445_s19 + $0x1f0] sm:$0xff]  ;;  %v467_v0 = vld [vmem:[%s1458_s4] sm:$0xff] }
  0x90   : > { %724 = vmatprep.mubr.f32.mxu1 %v278_v1  ;;  %564 = vmatmul.mubr.f32.vlgmr.msra.gmra.mxu0 %v275_v2 }
  0x91   : > { %725 = vmatmul.mubr.f32.vlgmr.msra.gmra.mxu1 %v277_v3  ;;  %569 = vmatprep.mubr.f32.mxu0 %v280_v4  ;;  %v468_v3 = vld [vmem:[%s1458_s4 + $0x8] sm:$0xff] }
  0x92   : > { %730 = vmatprep.mubr.f32.mxu1 %v282_v5 }
  0x94   : > { %570 = vmatmul.mubr.f32.gmra.mxu0 %v279_v6 }
  0x95   : > { %731 = vmatmul.mubr.f32.gmra.mxu1 %v281_v7  ;;  %575 = vmatprep.mubr.f32.mxu0 %v284_v8  ;;  %v469_v7 = vld [vmem:[%s1458_s4 + $0x10] sm:$0xff] }
  0x96   : > { %736 = vmatprep.mubr.f32.mxu1 %v286_v9 }
  0x98   : > { %576 = vmatmul.mubr.f32.gmra.mxu0 %v283_v10 }
  0x99   : > { %737 = vmatmul.mubr.f32.gmra.mxu1 %v285_v11  ;;  %581 = vmatprep.mubr.f32.mxu0 %v288_v12  ;;  %v470_v12 = vld [vmem:[%s1458_s4 + $0x18] sm:$0xff] }
  0x9a   : > { %742 = vmatprep.mubr.f32.mxu1 %v290_v13 }
  0x9c   : > { %582 = vmatmul.mubr.f32.gmra.mxu0 %v287_v14 }
  0x9d   : > { %743 = vmatmul.mubr.f32.gmra.mxu1 %v289_v15  ;;  %587 = vmatprep.mubr.f32.mxu0 %v292_v16 }
  0x9e   : > { %748 = vmatprep.mubr.f32.mxu1 %v294_v17  ;;  %v471_v17 = vld [vmem:[%s1458_s4 + $0x20] sm:$0xff] }
  0xa0   : > { %588 = vmatmul.mubr.f32.gmra.mxu0 %v291_v18 }
  0xa1   : > { %749 = vmatmul.mubr.f32.gmra.mxu1 %v293_v19  ;;  %593 = vmatprep.mubr.f32.mxu0 %v296_v20 }
  0xa2   : > { %754 = vmatprep.mubr.f32.mxu1 %v298_v21 }
  0xa4   : > { %594 = vmatmul.mubr.f32.gmra.mxu0 %v295_v22  ;;  %v472_v22 = vld [vmem:[%s1458_s4 + $0x28] sm:$0xff] }
  0xa5   : > { %755 = vmatmul.mubr.f32.gmra.mxu1 %v297_v23  ;;  %599 = vmatprep.mubr.f32.mxu0 %v300_v24 }
  0xa6   : > { %760 = vmatprep.mubr.f32.mxu1 %v302_v25 }
  0xa8   : > { %600 = vmatmul.mubr.f32.gmra.mxu0 %v299_v26 }
  0xa9   : > { %761 = vmatmul.mubr.f32.gmra.mxu1 %v301_v27  ;;  %605 = vmatprep.mubr.f32.mxu0 %v304_v28  ;;  %v473_v27 = vld [vmem:[%s1458_s4 + $0x30] sm:$0xff] }
  0xaa   : > { %766 = vmatprep.mubr.f32.mxu1 %v306_v29 }
  0xac   : > { %606 = vmatmul.mubr.f32.gmra.mxu0 %v303_v30 }
  0xad   : > { %767 = vmatmul.mubr.f32.gmra.mxu1 %v305_v31  ;;  %611 = vmatprep.mubr.f32.mxu0 %v308_v32  ;;  %v474_v32 = vld [vmem:[%s1458_s4 + $0x38] sm:$0xff] }
  0xae   : > { %772 = vmatprep.mubr.f32.mxu1 %v310_v33 }
  0xb0   : > { %612 = vmatmul.mubr.f32.gmra.mxu0 %v307_v34 }
  0xb1   : > { %773 = vmatmul.mubr.f32.gmra.mxu1 %v309_v35  ;;  %617 = vmatprep.mubr.f32.mxu0 %v312_v36 }
  0xb2   : > { %778 = vmatprep.mubr.f32.mxu1 %v314_v37  ;;  %v475_v37 = vld [vmem:[%s1458_s4 + $0x40] sm:$0xff] }
  0xb4   : > { %618 = vmatmul.mubr.f32.gmra.mxu0 %v311_v38 }
  0xb5   : > { %779 = vmatmul.mubr.f32.gmra.mxu1 %v313_v39  ;;  %623 = vmatprep.mubr.f32.mxu0 %v316_v40 }
  0xb6   : > { %784 = vmatprep.mubr.f32.mxu1 %v318_v41 }
  0xb8   : > { %624 = vmatmul.mubr.f32.gmra.mxu0 %v315_v42  ;;  %v476_v42 = vld [vmem:[%s1458_s4 + $0x48] sm:$0xff] }
  0xb9   : > { %785 = vmatmul.mubr.f32.gmra.mxu1 %v317_v43  ;;  %629 = vmatprep.mubr.f32.mxu0 %v320_v44 }
  0xba   : > { %790 = vmatprep.mubr.f32.mxu1 %v322_v45 }
  0xbc   : > { %630 = vmatmul.mubr.f32.gmra.mxu0 %v319_v46 }
  0xbd   : > { %791 = vmatmul.mubr.f32.gmra.mxu1 %v321_v47  ;;  %635 = vmatprep.mubr.f32.mxu0 %v324_v48  ;;  %v477_v47 = vld [vmem:[%s1458_s4 + $0x50] sm:$0xff] }
  0xbe   : > { %796 = vmatprep.mubr.f32.mxu1 %v326_v49 }
  0xc0   : > { %636 = vmatmul.mubr.f32.gmra.mxu0 %v323_v50 }
  0xc1   : > { %797 = vmatmul.mubr.f32.gmra.mxu1 %v325_v51  ;;  %641 = vmatprep.mubr.f32.mxu0 %v328_v52  ;;  %v478_v52 = vld [vmem:[%s1458_s4 + $0x58] sm:$0xff] }
  0xc2   : > { %802 = vmatprep.mubr.f32.mxu1 %v330_v53 }
  0xc4   : > { %642 = vmatmul.mubr.f32.gmra.mxu0 %v327_v54 }
  0xc5   : > { %803 = vmatmul.mubr.f32.gmra.mxu1 %v329_v55  ;;  %647 = vmatprep.mubr.f32.mxu0 %v332_v56 }
  0xc6   : > { %808 = vmatprep.mubr.f32.mxu1 %v334_v57  ;;  %v479_v57 = vld [vmem:[%s1458_s4 + $0x60] sm:$0xff] }
  0xc8   : > { %648 = vmatmul.mubr.f32.gmra.mxu0 %v331_v58 }
  0xc9   : > { %809 = vmatmul.mubr.f32.gmra.mxu1 %v333_v59  ;;  %653 = vmatprep.mubr.f32.mxu0 %v336_v60 }
  0xca   : > { %814 = vmatprep.mubr.f32.mxu1 %v338_v61 }
  0xcc   : > { %654 = vmatmul.mubr.f32.gmra.mxu0 %v335_v62  ;;  %v480_v62 = vld [vmem:[%s1458_s4 + $0x68] sm:$0xff] }
  0xcd   : > { %815 = vmatmul.mubr.f32.gmra.mxu1 %v337_v63 }
 0x150   : > { %v565_v1 = vpop.f32.mrf.mxu0 }
 0x151   : > { %v726_v2 = vpop.f32.mrf.mxu1  ;;  %v566_v4 = vadd.f32 %v565_v1, %v467_v0 }
 0x152   : > { %v567_v5 = vpop.f32.mrf.mxu0 }
 0x153   : > { %v728_v6 = vpop.f32.mrf.mxu1  ;;  %v727_v8 = vadd.f32 %v726_v2, %v566_v4  ;;  %v568_v9 = vadd.f32 %v567_v5, %v468_v3  ;;  %v481_v3 = vld [vmem:[%s1458_s4 + $0x70] sm:$0xff] }
 0x154   : > { %v571_v10 = vpop.f32.mrf.mxu0 }
 0x155   : > { %v732_v11 = vpop.f32.mrf.mxu1  ;;  %821 = vst [vmem:[%s1534_s20] sm:$0xff] %v727_v8  ;;  %v729_v13 = vadd.f32 %v728_v6, %v568_v9  ;;  %v572_v14 = vadd.f32 %v571_v10, %v469_v7  ;;  %v482_v8 = vld [vmem:[%s1458_s4 + $0x78] sm:$0xff] }
 0x156   : > { %v573_v15 = vpop.f32.mrf.mxu0 }
 0x157   : > { %v734_v16 = vpop.f32.mrf.mxu1  ;;  %822 = vst [vmem:[%s1534_s20 + $0x8] sm:$0xff] %v729_v13  ;;  %v733_v18 = vadd.f32 %v732_v11, %v572_v14  ;;  %v574_v19 = vadd.f32 %v573_v15, %v470_v12  ;;  %v483_v13 = vld [vmem:[%s1458_s4 + $0x80] sm:$0xff] }
 0x158   : > { %v577_v20 = vpop.f32.mrf.mxu0 }
 0x159   : > { %v738_v21 = vpop.f32.mrf.mxu1  ;;  %823 = vst [vmem:[%s1534_s20 + $0x10] sm:$0xff] %v733_v18  ;;  %v735_v23 = vadd.f32 %v734_v16, %v574_v19  ;;  %v578_v24 = vadd.f32 %v577_v20, %v471_v17  ;;  %v484_v18 = vld [vmem:[%s1458_s4 + $0x88] sm:$0xff] }
 0x15a   : > { %v579_v25 = vpop.f32.mrf.mxu0 }
 0x15b   : > { %v740_v26 = vpop.f32.mrf.mxu1  ;;  %824 = vst [vmem:[%s1534_s20 + $0x18] sm:$0xff] %v735_v23  ;;  %v739_v28 = vadd.f32 %v738_v21, %v578_v24  ;;  %v580_v29 = vadd.f32 %v579_v25, %v472_v22  ;;  %v485_v23 = vld [vmem:[%s1458_s4 + $0x90] sm:$0xff] }
 0x15c   : > { %v583_v30 = vpop.f32.mrf.mxu0 }
 0x15d   : > { %v744_v31 = vpop.f32.mrf.mxu1  ;;  %825 = vst [vmem:[%s1534_s20 + $0x20] sm:$0xff] %v739_v28  ;;  %v741_v33 = vadd.f32 %v740_v26, %v580_v29  ;;  %v584_v34 = vadd.f32 %v583_v30, %v473_v27  ;;  %v486_v28 = vld [vmem:[%s1458_s4 + $0x98] sm:$0xff] }
 0x15e   : > { %v585_v35 = vpop.f32.mrf.mxu0 }
 0x15f   : > { %v746_v36 = vpop.f32.mrf.mxu1  ;;  %826 = vst [vmem:[%s1534_s20 + $0x28] sm:$0xff] %v741_v33  ;;  %v745_v38 = vadd.f32 %v744_v31, %v584_v34  ;;  %v586_v39 = vadd.f32 %v585_v35, %v474_v32  ;;  %v487_v33 = vld [vmem:[%s1458_s4 + $0xa0] sm:$0xff] }
 0x160   : > { %v589_v40 = vpop.f32.mrf.mxu0 }
 0x161   : > { %v750_v41 = vpop.f32.mrf.mxu1  ;;  %827 = vst [vmem:[%s1534_s20 + $0x30] sm:$0xff] %v745_v38  ;;  %v747_v43 = vadd.f32 %v746_v36, %v586_v39  ;;  %v590_v44 = vadd.f32 %v589_v40, %v475_v37  ;;  %v488_v38 = vld [vmem:[%s1458_s4 + $0xa8] sm:$0xff] }
 0x162   : > { %v591_v45 = vpop.f32.mrf.mxu0 }
 0x163   : > { %v752_v46 = vpop.f32.mrf.mxu1  ;;  %828 = vst [vmem:[%s1534_s20 + $0x38] sm:$0xff] %v747_v43  ;;  %v751_v48 = vadd.f32 %v750_v41, %v590_v44  ;;  %v592_v49 = vadd.f32 %v591_v45, %v476_v42  ;;  %v489_v43 = vld [vmem:[%s1458_s4 + $0xb0] sm:$0xff] }
 0x164   : > { %v595_v50 = vpop.f32.mrf.mxu0 }
 0x165   : > { %v756_v51 = vpop.f32.mrf.mxu1  ;;  %829 = vst [vmem:[%s1534_s20 + $0x40] sm:$0xff] %v751_v48  ;;  %v753_v53 = vadd.f32 %v752_v46, %v592_v49  ;;  %v596_v54 = vadd.f32 %v595_v50, %v477_v47  ;;  %v490_v48 = vld [vmem:[%s1458_s4 + $0xb8] sm:$0xff] }
 0x166   : > { %v597_v55 = vpop.f32.mrf.mxu0 }
 0x167   : > { %v758_v56 = vpop.f32.mrf.mxu1  ;;  %830 = vst [vmem:[%s1534_s20 + $0x48] sm:$0xff] %v753_v53  ;;  %v757_v58 = vadd.f32 %v756_v51, %v596_v54  ;;  %v598_v59 = vadd.f32 %v597_v55, %v478_v52  ;;  %v491_v53 = vld [vmem:[%s1458_s4 + $0xc0] sm:$0xff] }
 0x168   : > { %v601_v60 = vpop.f32.mrf.mxu0 }
 0x169   : > { %v762_v61 = vpop.f32.mrf.mxu1  ;;  %831 = vst [vmem:[%s1534_s20 + $0x50] sm:$0xff] %v757_v58  ;;  %v759_v63 = vadd.f32 %v758_v56, %v598_v59  ;;  %v602_v0 = vadd.f32 %v601_v60, %v479_v57  ;;  %v492_v58 = vld [vmem:[%s1458_s4 + $0xc8] sm:$0xff] }
 0x16a   : > { %v603_v1 = vpop.f32.mrf.mxu0 }
 0x16b   : > { %v764_v2 = vpop.f32.mrf.mxu1  ;;  %832 = vst [vmem:[%s1534_s20 + $0x58] sm:$0xff] %v759_v63  ;;  %v763_v4 = vadd.f32 %v762_v61, %v602_v0  ;;  %v604_v5 = vadd.f32 %v603_v1, %v480_v62  ;;  %v493_v63 = vld [vmem:[%s1458_s4 + $0xd0] sm:$0xff] }
 0x16c   : > { %v607_v6 = vpop.f32.mrf.mxu0 }
 0x16d   : > { %v768_v7 = vpop.f32.mrf.mxu1  ;;  %833 = vst [vmem:[%s1534_s20 + $0x60] sm:$0xff] %v763_v4  ;;  %v765_v9 = vadd.f32 %v764_v2, %v604_v5  ;;  %v608_v10 = vadd.f32 %v607_v6, %v481_v3  ;;  %v494_v4 = vld [vmem:[%s1458_s4 + $0xd8] sm:$0xff] }
 0x16e   : > { %v609_v11 = vpop.f32.mrf.mxu0 }
 0x16f   : > { %v770_v12 = vpop.f32.mrf.mxu1  ;;  %834 = vst [vmem:[%s1534_s20 + $0x68] sm:$0xff] %v765_v9  ;;  %v769_v14 = vadd.f32 %v768_v7, %v608_v10  ;;  %v610_v15 = vadd.f32 %v609_v11, %v482_v8  ;;  %v495_v9 = vld [vmem:[%s1458_s4 + $0xe0] sm:$0xff] }
 0x170   : > { %v613_v16 = vpop.f32.mrf.mxu0 }
 0x171   : > { %v774_v17 = vpop.f32.mrf.mxu1  ;;  %835 = vst [vmem:[%s1534_s20 + $0x70] sm:$0xff] %v769_v14  ;;  %v771_v19 = vadd.f32 %v770_v12, %v610_v15  ;;  %v614_v20 = vadd.f32 %v613_v16, %v483_v13  ;;  %v496_v14 = vld [vmem:[%s1458_s4 + $0xe8] sm:$0xff] }
 0x172   : > { %v615_v21 = vpop.f32.mrf.mxu0 }
 0x173   : > { %v776_v22 = vpop.f32.mrf.mxu1  ;;  %836 = vst [vmem:[%s1534_s20 + $0x78] sm:$0xff] %v771_v19  ;;  %v775_v24 = vadd.f32 %v774_v17, %v614_v20  ;;  %v616_v25 = vadd.f32 %v615_v21, %v484_v18  ;;  %v497_v19 = vld [vmem:[%s1458_s4 + $0xf0] sm:$0xff] }
 0x174   : > { %v619_v26 = vpop.f32.mrf.mxu0 }
 0x175   : > { %v780_v27 = vpop.f32.mrf.mxu1  ;;  %837 = vst [vmem:[%s1534_s20 + $0x80] sm:$0xff] %v775_v24  ;;  %v777_v29 = vadd.f32 %v776_v22, %v616_v25  ;;  %v620_v30 = vadd.f32 %v619_v26, %v485_v23  ;;  %v498_v24 = vld [vmem:[%s1458_s4 + $0xf8] sm:$0xff] }
 0x176   : > { %v621_v31 = vpop.f32.mrf.mxu0 }
 0x177   : > { %v782_v32 = vpop.f32.mrf.mxu1  ;;  %838 = vst [vmem:[%s1534_s20 + $0x88] sm:$0xff] %v777_v29  ;;  %v781_v34 = vadd.f32 %v780_v27, %v620_v30  ;;  %v622_v35 = vadd.f32 %v621_v31, %v486_v28 }
 0x178   : > { %v625_v36 = vpop.f32.mrf.mxu0 }
 0x179   : > { %v786_v37 = vpop.f32.mrf.mxu1  ;;  %839 = vst [vmem:[%s1534_s20 + $0x90] sm:$0xff] %v781_v34  ;;  %v783_v39 = vadd.f32 %v782_v32, %v622_v35  ;;  %v626_v40 = vadd.f32 %v625_v36, %v487_v33 }
 0x17a   : > { %v627_v41 = vpop.f32.mrf.mxu0 }
 0x17b   : > { %v788_v42 = vpop.f32.mrf.mxu1  ;;  %840 = vst [vmem:[%s1534_s20 + $0x98] sm:$0xff] %v783_v39  ;;  %v787_v44 = vadd.f32 %v786_v37, %v626_v40  ;;  %v628_v45 = vadd.f32 %v627_v41, %v488_v38 }
 0x17c   : > { %v631_v46 = vpop.f32.mrf.mxu0 }
 0x17d   : > { %v792_v47 = vpop.f32.mrf.mxu1  ;;  %841 = vst [vmem:[%s1534_s20 + $0xa0] sm:$0xff] %v787_v44  ;;  %v789_v49 = vadd.f32 %v788_v42, %v628_v45  ;;  %v632_v50 = vadd.f32 %v631_v46, %v489_v43 }
 0x17e   : > { %v633_v51 = vpop.f32.mrf.mxu0 }
 0x17f   : > { %v794_v52 = vpop.f32.mrf.mxu1  ;;  %842 = vst [vmem:[%s1534_s20 + $0xa8] sm:$0xff] %v789_v49  ;;  %v793_v54 = vadd.f32 %v792_v47, %v632_v50  ;;  %v634_v55 = vadd.f32 %v633_v51, %v490_v48 }
 0x180   : > { %v637_v56 = vpop.f32.mrf.mxu0 }
 0x181   : > { %v798_v57 = vpop.f32.mrf.mxu1  ;;  %843 = vst [vmem:[%s1534_s20 + $0xb0] sm:$0xff] %v793_v54  ;;  %v795_v59 = vadd.f32 %v794_v52, %v634_v55  ;;  %v638_v60 = vadd.f32 %v637_v56, %v491_v53 }
 0x182   : > { %v639_v61 = vpop.f32.mrf.mxu0 }
 0x183   : > { %v800_v62 = vpop.f32.mrf.mxu1  ;;  %844 = vst [vmem:[%s1534_s20 + $0xb8] sm:$0xff] %v795_v59  ;;  %v799_v0 = vadd.f32 %v798_v57, %v638_v60  ;;  %v640_v1 = vadd.f32 %v639_v61, %v492_v58 }
 0x184   : > { %v643_v2 = vpop.f32.mrf.mxu0 }
 0x185   : > { %v804_v3 = vpop.f32.mrf.mxu1  ;;  %845 = vst [vmem:[%s1534_s20 + $0xc0] sm:$0xff] %v799_v0  ;;  %v801_v5 = vadd.f32 %v800_v62, %v640_v1  ;;  %v644_v6 = vadd.f32 %v643_v2, %v493_v63 }
 0x186   : > { %v645_v7 = vpop.f32.mrf.mxu0 }
 0x187   : > { %v806_v8 = vpop.f32.mrf.mxu1  ;;  %846 = vst [vmem:[%s1534_s20 + $0xc8] sm:$0xff] %v801_v5  ;;  %v805_v10 = vadd.f32 %v804_v3, %v644_v6  ;;  %v646_v11 = vadd.f32 %v645_v7, %v494_v4 }
 0x188   : > { %v649_v12 = vpop.f32.mrf.mxu0 }
 0x189   : > { %v810_v13 = vpop.f32.mrf.mxu1  ;;  %847 = vst [vmem:[%s1534_s20 + $0xd0] sm:$0xff] %v805_v10  ;;  %v807_v15 = vadd.f32 %v806_v8, %v646_v11  ;;  %v650_v16 = vadd.f32 %v649_v12, %v495_v9 }
 0x18a   : > { %v651_v17 = vpop.f32.mrf.mxu0 }
 0x18b   : > { %v812_v18 = vpop.f32.mrf.mxu1  ;;  %848 = vst [vmem:[%s1534_s20 + $0xd8] sm:$0xff] %v807_v15  ;;  %v811_v20 = vadd.f32 %v810_v13, %v650_v16  ;;  %v652_v21 = vadd.f32 %v651_v17, %v496_v14 }
 0x18c   : > { %v655_v22 = vpop.f32.mrf.mxu0 }
 0x18d   : > { %v816_v23 = vpop.f32.mrf.mxu1  ;;  %849 = vst [vmem:[%s1534_s20 + $0xe0] sm:$0xff] %v811_v20  ;;  %v813_v25 = vadd.f32 %v812_v18, %v652_v21  ;;  %v656_v26 = vadd.f32 %v655_v22, %v497_v19 }
 0x18e   : > { %v657_v27 = vpop.f32.mrf.mxu0 }
 0x18f   : > { %850 = vst [vmem:[%s1534_s20 + $0xe8] sm:$0xff] %v813_v25  ;;  %v817_v28 = vadd.f32 %v816_v23, %v656_v26  ;;  %v658_v29 = vadd.f32 %v657_v27, %v498_v24  ;;  %v818_v30 = vpop.f32.mrf.mxu1 }
 0x191   : > { %851 = vst [vmem:[%s1534_s20 + $0xf0] sm:$0xff] %v817_v28  ;;  %v819_v31 = vadd.f32 %v818_v30, %v658_v29 }
 0x193   : > { %852 = vst [vmem:[%s1534_s20 + $0xf8] sm:$0xff] %v819_v31 }
 0x194   : > { %1198 = shalt.err (!%p1195_p1)
}
 0x195   : > { %s1199_s29 = scalar_lea.hbm %s1599_s30, 4096  ;;  %s1203_s19 = scalar_lea.hbm %s1654_s3, 8192 }
 0x196   : > { %p1200_p6 = scmp.ne.s32.totalorder %s1599_s30, %s1199_s29  ;;  %p1204_p13 = scmp.lt.s32.totalorder %s1599_s30, %s1654_s3 }
 0x197   : > { %p1205_p12 = scmp.lt.s32.totalorder %s1203_s19, %s1199_s29 }
 0x198   : > { %p1201_p9 = pnand %p1200_p6, %p1662_p5 }
 0x199   : > { %p1206_p11 = por %p1205_p12, %p1204_p13 }
 0x19a   : > { %p1202_p3 = pneg %p1201_p9 }
 0x19c   : > { %p1207_p7 = pnand %p1206_p11, %p1202_p3 }
 0x19e   : > { %1210 = shalt.err (!%p1207_p7)
}
 0x19f   : > { %s1283_s20 = smov 256   ;;  %s1284_s22 = smov 16  }
 0x1a0   : > { %1027 = dma.vmem_to_hbm [thread:$0]  (%p1662_p5), %s1601_s5, 4096, %s1599_s30, %s854_s15, %s1283_s20, %s1283_s20, %s1284_s22  }
 0x1a1 PF: > { %s885_s21 = sand.u32 1, %s1253_s12   ;;  %p1663_p10 = scmp.ne.s32.totalorder %s1659_s25, 0 }
 0x1a2   : > { %p1664_p2 = scmp.ge.s32.totalorder %s1273_s17, 2  ;;  %s886_s26 = scalar_lea.sflag [#allocation4], %s885_s21 }
 0x1a4   : > { %p1041_p4 = pnand %p1664_p2, %p1663_p10 }
 0x1a6   : > { %p1042_p0 = pneg %p1041_p4 }
 0x1a8   : > { %1248 = dma.done.wait (%p1042_p0), %s886_s26, 4096  }
 0x1a9   : > { %1250 = vsyncadd (%p1042_p0), %s886_s26, 4294963200  ;;  %s20_s17 = sadd.s32 1, %s1273_s17   ;;  %s1665_s12 = smov %s1257_s13 }
 0x1aa   : > { %p17_p8 = scmp.ge.s32.totalorder %s20_s17, 4   ;;  %s1666_s13 = smov %s1261_s14 }
 0x1ab   : > { %s1667_s14 = smov %s1353_s24  ;;  %s1668_s15 = smov %s1269_s16 }
 0x1ac   : > { %s1669_s16 = smov %s1671_s18  ;;  %19 = sbr.rel (!%p17_p8) target bundleno = 7 (0x7), region = 93 }
 0x1b1   :  { %891 = vsyncpa [#allocation3], 1 }
 0x1b2   :  { %893 = vsyncpa [#allocation3 + $0x1], 1 }
 0x1b3   :  { %894 = vsyncpa [#allocation6], 1 }
 0x1b4   :  { %895 = vsyncpa [#allocation4], 1 }
 0x1b5   :  { %897 = vsyncpa [#allocation4 + $0x1], 1 }

</bundles_post_ra>
